<compile_context>
chip_gen: v5e
topology: v5e:2x2
jax: 0.10.0
libtpu: 0.0.40
codegen_flags: <defaults>
</compile_context>

<pallas_src>
import jax
import jax.numpy as jnp
from jax.experimental import pallas as pl
from jax.experimental.pallas import tpu as pltpu

_MIB = 1024 * 1024


def pos_embed_kernel(cls_ref, pos_ref, x_ref, o_ref):
    # cls_ref: (1, 1, Dt)      precomputed class_token + pos_embedding[:, :1, :]
    # pos_ref: (1, N, Dt)      pos_embedding[:, 1:, :]
    # x_ref:   (bt, N, Dt)     patch embeddings for this batch tile
    # o_ref:   (bt, N+1, Dt)   output tile
    bt = o_ref.shape[0]
    dt = o_ref.shape[-1]

    # Row 0 of every batch element in the tile: the (already summed) class-token row.
    o_ref[:, 0:1, :] = jnp.broadcast_to(cls_ref[...], (bt, 1, dt))

    # Rows 1..N: single streaming add; x / pos_rest loads are sublane-aligned.
    o_ref[:, 1:, :] = x_ref[...] + pos_ref[...]
    # TODO(synk): dropout omitted (module treated in eval mode -> identity).


def _vmem_info():
    """Generation-aware VMEM budget: (working-set target, hard limit cap)."""
    try:
        cap = int(pltpu.get_tpu_info().vmem_capacity_bytes)
    except Exception:
        cap = 64 * _MIB                      # conservative default (v7x per-core VMEM)
    target = cap * 3 // 4                    # ~96 MiB on v5e/v6e, ~48 MiB on v7x
    limit_cap = cap - 8 * _MIB               # never ask for more than physical - margin
    return target, limit_cap


def _choose_tiles(B, N, D, itemsize, target):
    """Pick (bt, dt, n_b, n_d, est_bytes) for the streaming add."""

    def ws(bt, dt, res_bufs):
        # x block + out block, double-buffered, plus resident pos_rest + cls row.
        stream = 2 * itemsize * bt * (N * dt + (N + 1) * dt)
        resident = res_bufs * itemsize * (N * dt + dt)
        return stream + resident

    # D tile: keep full D unless even a single batch element blows the budget.
    dt = D
    if ws(1, D, 1) > target and D % 128 == 0:
        dt = 128
        for cand in range(D - 128, 127, -128):
            if D % cand == 0 and ws(1, cand, 2) <= target:
                dt = cand
                break
    n_d = max(1, D // dt)
    res_bufs = 1 if n_d == 1 else 2          # resident blocks constant only when n_d == 1

    # Batch tile: largest bt that fits, then capped so the grid keeps >= ~4
    # steps (>= 2 for B < 4) -> pipelining + both v7x TensorCores busy.
    fit_bt = 1
    for cand in range(1, B + 1):
        if ws(cand, dt, res_bufs) <= target:
            fit_bt = cand
        else:
            break
    bt = max(1, min(fit_bt, max(1, B // 4)))
    n_b = pl.cdiv(B, bt)

    est = ws(bt, dt, 2)                      # conservative estimate for vmem_limit
    return bt, dt, n_b, n_d, est


def _build(B, N, D, dtype, bt, dt, n_b, n_d, vmem_limit, single_buffer_resident):
    resident_kwargs = {}
    if single_buffer_resident:
        # Constant-index resident blocks only need one buffer; if D is tiled the
        # index changes per d-step, so keep the default depth of 2 there.
        resident_kwargs = dict(pipeline_mode=pl.Buffered(1 if n_d == 1 else 2))

    grid_spec = pl.GridSpec(
        grid=(n_b, n_d),
        in_specs=[
            pl.BlockSpec((1, 1, dt), lambda b, d: (0, 0, d), **resident_kwargs),   # cls_row
            pl.BlockSpec((1, N, dt), lambda b, d: (0, 0, d), **resident_kwargs),   # pos_rest
            pl.BlockSpec((bt, N, dt), lambda b, d: (b, 0, d)),                      # x tile
        ],
        out_specs=pl.BlockSpec((bt, N + 1, dt), lambda b, d: (b, 0, d)),
    )
    return pl.pallas_call(
        pos_embed_kernel,
        out_shape=jax.ShapeDtypeStruct((B, N + 1, D), dtype),
        grid_spec=grid_spec,
        compiler_params=pltpu.CompilerParams(
            dimension_semantics=("parallel", "parallel"),
            vmem_limit_bytes=vmem_limit,
        ),
    )


def positional_embedding(x, class_token, pos_embedding):
    """x: (B, N, D); class_token: (1, 1, D); pos_embedding: (1, N+1, D)."""
    B, N, D = x.shape
    assert class_token.shape == (1, 1, D)
    assert pos_embedding.shape == (1, N + 1, D)

    dtype = x.dtype
    itemsize = jnp.dtype(dtype).itemsize

    # Hoisted once in the wrapper: class-token output row, added in the
    # parameter dtype then cast.  pos_rest is cast to x.dtype so the streaming
    # add stays narrow (halves HBM traffic for bf16 activations); this rounds
    # slightly vs an add-in-f32-then-cast when params are f32 and x is bf16.
    cls_row = (class_token + pos_embedding[:, :1, :]).astype(dtype)
    pos_rest = pos_embedding[:, 1:, :].astype(dtype)

    target, limit_cap = _vmem_info()
    bt, dt, n_b, n_d, est = _choose_tiles(B, N, D, itemsize, target)
    vmem_limit = int(min(max(est + 8 * _MIB, 32 * _MIB), limit_cap))

    args = (cls_row, pos_rest, x)
    try:
        # Preferred: single-buffer the grid-resident inputs (reclaims VMEM).
        return _build(B, N, D, dtype, bt, dt, n_b, n_d, vmem_limit,
                      single_buffer_resident=True)(*args)
    except Exception:
        # Fallback: default double-buffering everywhere (always supported).
        return _build(B, N, D, dtype, bt, dt, n_b, n_d, vmem_limit,
                      single_buffer_resident=False)(*args)


if __name__ == "__main__":
    # Small shapes consistent with the module: batch=2, num_patches=8, embed_dim=128.
    B, N, D = 2, 8, 128
    key = jax.random.PRNGKey(0)
    k_x, k_cls, k_pos = jax.random.split(key, 3)

    x = jax.random.normal(k_x, (B, N, D), dtype=jnp.float32)
    class_token = jax.random.normal(k_cls, (1, 1, D), dtype=jnp.float32)
    pos_embedding = jax.random.normal(k_pos, (1, N + 1, D), dtype=jnp.float32)

    out = positional_embedding(x, class_token, pos_embedding)
    out = jax.block_until_ready(out)

    # Reference check (pure JAX): concat class token then add positional embedding.
    ref = jnp.concatenate([jnp.broadcast_to(class_token, (B, 1, D)), x], axis=1)
    ref = ref + pos_embedding
    assert out.shape == (B, N + 1, D)
    assert jnp.allclose(out, ref, atol=1e-6), "mismatch vs reference"

    print("KERNEL_OK")
</pallas_src>

<mosaic_0001>
module attributes {stable_mosaic.version = 11 : i64} {
  func.func @pos_embed_kernel(%arg0: i32, %arg1: i32, %arg2: memref<1x1x128xf32, #tpu.memory_space<vmem>>, %arg3: memref<1x8x128xf32, #tpu.memory_space<vmem>>, %arg4: memref<1x8x128xf32, #tpu.memory_space<vmem>>, %arg5: memref<1x9x128xf32, #tpu.memory_space<vmem>>) attributes {dimension_semantics = [#tpu.dimension_semantics<parallel>, #tpu.dimension_semantics<parallel>], iteration_bounds = array<i64: 2, 1>, scalar_prefetch = 0 : i64, scratch_operands = 0 : i64, tpu.core_type = #tpu.core_type<tc>, window_params = [{pipeline_mode = #tpu.pipeline_mode<synchronous>, transform_indices = @transform_0, window_bounds = array<i64: 1, 1, 128>}, {pipeline_mode = #tpu.pipeline_mode<synchronous>, transform_indices = @transform_1, window_bounds = array<i64: 1, 8, 128>}, {transform_indices = @transform_2, window_bounds = array<i64: 1, 8, 128>}, {transform_indices = @transform_3, window_bounds = array<i64: 1, 9, 128>}]} {
    %c0 = arith.constant 0 : index
    %c0_0 = arith.constant 0 : index
    %c0_1 = arith.constant 0 : index
    %0 = vector.load %arg2[%c0, %c0_0, %c0_1] : memref<1x1x128xf32, #tpu.memory_space<vmem>>, vector<1x1x128xf32>
    %c0_2 = arith.constant 0 : index
    %c0_3 = arith.constant 0 : index
    %c0_4 = arith.constant 0 : index
    %1 = vector.load %arg5[%c0_2, %c0_3, %c0_4] : memref<1x9x128xf32, #tpu.memory_space<vmem>>, vector<1x1x128xf32>
    tpu.vector_store %arg5[%c0_2, %c0_3, %c0_4], %0 {strides = array<i32>} : memref<1x9x128xf32, #tpu.memory_space<vmem>>, vector<1x1x128xf32>,
    %c0_5 = arith.constant 0 : index
    %c0_6 = arith.constant 0 : index
    %c0_7 = arith.constant 0 : index
    %2 = vector.load %arg4[%c0_5, %c0_6, %c0_7] : memref<1x8x128xf32, #tpu.memory_space<vmem>>, vector<1x8x128xf32>
    %c0_8 = arith.constant 0 : index
    %c0_9 = arith.constant 0 : index
    %c0_10 = arith.constant 0 : index
    %3 = vector.load %arg3[%c0_8, %c0_9, %c0_10] : memref<1x8x128xf32, #tpu.memory_space<vmem>>, vector<1x8x128xf32>
    %4 = arith.addf %2, %3 : vector<1x8x128xf32>
    %c0_11 = arith.constant 0 : index
    %c1 = arith.constant 1 : index
    %c0_12 = arith.constant 0 : index
    %5 = vector.load %arg5[%c0_11, %c1, %c0_12] : memref<1x9x128xf32, #tpu.memory_space<vmem>>, vector<1x8x128xf32>
    tpu.vector_store %arg5[%c0_11, %c1, %c0_12], %4 {strides = array<i32>} : memref<1x9x128xf32, #tpu.memory_space<vmem>>, vector<1x8x128xf32>,
    return
  }
  func.func @transform_0(%arg0: i32, %arg1: i32) -> (i32, i32, i32) {
    %c0_i32 = arith.constant 0 : i32
    %c0_i32_0 = arith.constant 0 : i32
    %c0_i32_1 = arith.constant 0 : i32
    return %c0_i32, %c0_i32_0, %arg1 : i32, i32, i32
  }
  func.func @transform_1(%arg0: i32, %arg1: i32) -> (i32, i32, i32) {
    %c0_i32 = arith.constant 0 : i32
    %c0_i32_0 = arith.constant 0 : i32
    %c0_i32_1 = arith.constant 0 : i32
    return %c0_i32, %c0_i32_0, %arg1 : i32, i32, i32
  }
  func.func @transform_2(%arg0: i32, %arg1: i32) -> (i32, i32, i32) {
    %c0_i32 = arith.constant 0 : i32
    %c0_i32_0 = arith.constant 0 : i32
    return %arg0, %c0_i32, %arg1 : i32, i32, i32
  }
  func.func @transform_3(%arg0: i32, %arg1: i32) -> (i32, i32, i32) {
    %c0_i32 = arith.constant 0 : i32
    %c0_i32_0 = arith.constant 0 : i32
    return %arg0, %c0_i32, %arg1 : i32, i32, i32
  }
}

module attributes {stable_mosaic.version = 11 : i64} {
  func.func @pos_embed_kernel(%arg0: i32, %arg1: i32, %arg2: memref<1x1x128xf32, #tpu.memory_space<vmem>>, %arg3: memref<1x8x128xf32, #tpu.memory_space<vmem>>, %arg4: memref<1x8x128xf32, #tpu.memory_space<vmem>>, %arg5: memref<1x9x128xf32, #tpu.memory_space<vmem>>) attributes {dimension_semantics = [#tpu.dimension_semantics<parallel>, #tpu.dimension_semantics<parallel>], iteration_bounds = array<i64: 2, 1>, scalar_prefetch = 0 : i64, scratch_operands = 0 : i64, tpu.core_type = #tpu.core_type<tc>, window_params = [{transform_indices = @transform_0, window_bounds = array<i64: 1, 1, 128>}, {transform_indices = @transform_1, window_bounds = array<i64: 1, 8, 128>}, {transform_indices = @transform_2, window_bounds = array<i64: 1, 8, 128>}, {transform_indices = @transform_3, window_bounds = array<i64: 1, 9, 128>}]} {
    %c0 = arith.constant 0 : index
    %c0_0 = arith.constant 0 : index
    %c0_1 = arith.constant 0 : index
    %0 = vector.load %arg2[%c0, %c0_0, %c0_1] : memref<1x1x128xf32, #tpu.memory_space<vmem>>, vector<1x1x128xf32>
    %c0_2 = arith.constant 0 : index
    %c0_3 = arith.constant 0 : index
    %c0_4 = arith.constant 0 : index
    %1 = vector.load %arg5[%c0_2, %c0_3, %c0_4] : memref<1x9x128xf32, #tpu.memory_space<vmem>>, vector<1x1x128xf32>
    tpu.vector_store %arg5[%c0_2, %c0_3, %c0_4], %0 {strides = array<i32>} : memref<1x9x128xf32, #tpu.memory_space<vmem>>, vector<1x1x128xf32>,
    %c0_5 = arith.constant 0 : index
    %c0_6 = arith.constant 0 : index
    %c0_7 = arith.constant 0 : index
    %2 = vector.load %arg4[%c0_5, %c0_6, %c0_7] : memref<1x8x128xf32, #tpu.memory_space<vmem>>, vector<1x8x128xf32>
    %c0_8 = arith.constant 0 : index
    %c0_9 = arith.constant 0 : index
    %c0_10 = arith.constant 0 : index
    %3 = vector.load %arg3[%c0_8, %c0_9, %c0_10] : memref<1x8x128xf32, #tpu.memory_space<vmem>>, vector<1x8x128xf32>
    %4 = arith.addf %2, %3 : vector<1x8x128xf32>
    %c0_11 = arith.constant 0 : index
    %c1 = arith.constant 1 : index
    %c0_12 = arith.constant 0 : index
    %5 = vector.load %arg5[%c0_11, %c1, %c0_12] : memref<1x9x128xf32, #tpu.memory_space<vmem>>, vector<1x8x128xf32>
    tpu.vector_store %arg5[%c0_11, %c1, %c0_12], %4 {strides = array<i32>} : memref<1x9x128xf32, #tpu.memory_space<vmem>>, vector<1x8x128xf32>,
    return
  }
  func.func @transform_0(%arg0: i32, %arg1: i32) -> (i32, i32, i32) {
    %c0_i32 = arith.constant 0 : i32
    %c0_i32_0 = arith.constant 0 : i32
    %c0_i32_1 = arith.constant 0 : i32
    return %c0_i32, %c0_i32_0, %arg1 : i32, i32, i32
  }
  func.func @transform_1(%arg0: i32, %arg1: i32) -> (i32, i32, i32) {
    %c0_i32 = arith.constant 0 : i32
    %c0_i32_0 = arith.constant 0 : i32
    %c0_i32_1 = arith.constant 0 : i32
    return %c0_i32, %c0_i32_0, %arg1 : i32, i32, i32
  }
  func.func @transform_2(%arg0: i32, %arg1: i32) -> (i32, i32, i32) {
    %c0_i32 = arith.constant 0 : i32
    %c0_i32_0 = arith.constant 0 : i32
    return %arg0, %c0_i32, %arg1 : i32, i32, i32
  }
  func.func @transform_3(%arg0: i32, %arg1: i32) -> (i32, i32, i32) {
    %c0_i32 = arith.constant 0 : i32
    %c0_i32_0 = arith.constant 0 : i32
    return %arg0, %c0_i32, %arg1 : i32, i32, i32
  }
}

</mosaic_0001>

<bundles_post_ra>
// kernel: tpu_custom_call.1
= control target key start
LH: loop header
LB: loop body
LE: loop exit
PB: predicated region body
PF: predicated region fallthrough
CT: control target
= control target key end

     0   :  { %8 = vsyncpa [#allocation3], 0  ;;  %s761_s0 = inlined_call_operand.hbm [shape: f32[1,1,128], index: 0, kind: input, shape index: {}]   ;;  %s762_s1 = inlined_call_operand.hbm [shape: f32[1,8,128], index: 1, kind: input, shape index: {}]   ;;  %s763_s2 = inlined_call_operand.hbm [shape: f32[2,8,128], index: 2, kind: input, shape index: {}]   ;;  %s764_s3 = inlined_call_operand.vmem [shape: f32[2,9,128], index: 3, kind: output, shape index: {}]  }
   0x1   :  { %9 = vsyncpa [#allocation5], 0  ;;  %s636_s12 = smov 0   ;;  %s638_s13 = smov 0  }
   0x2   :  { %s640_s14 = smov 0   ;;  %s642_s15 = smov 0  }
   0x3   :  { %s644_s16 = smov 0   ;;  %s646_s17 = smov 0  }
   0x4 LB: > { %s371_s18 = sadd.s32 4294967295, %s612_s17   ;;  %p101_p0 = scmp.ne.s32.totalorder %s596_s13, %s592_s12  ;;  %s612_s17 = sphi %s646_s17, %s15_s17   ;;  %s608_s16 = sphi %s644_s16, %s773_s16   ;;  %s604_s15 = sphi %s642_s15, %s772_s15   ;;  %s600_s14 = sphi %s640_s14, %s771_s14   ;;  %s596_s13 = sphi %s638_s13, %s770_s13   ;;  %s592_s12 = sphi %s636_s12, %s769_s12  }
   0x5   : > { %p668_p1 = scmp.eq.s32.totalorder %s371_s18, 0  ;;  %p373_p2 = scmp.ge.s32.totalorder %s612_s17, 1 }
   0x6   : > { %p140_p3 = scmp.lt.s32.totalorder %s612_s17, 3  ;;  %s153_s23 = sshll.u32 %s761_s0, 4  ;;  %s154_s23 = int_to_ptr.hbm [resolvable:$true] %s153_s23 }
   0x7   : > { %p676_p4 = por %p668_p1, %p101_p0  ;;  %s614_s25 = smov [#allocation2]  }
   0x8   : > { %p683_p5 = pnand %p373_p2, %p140_p3  ;;  %s155_s26 = sshll.u32 %s614_s25, 4  ;;  %s156_s26 = int_to_ptr.vmem [resolvable:$true] %s155_s26 }
   0x9   : > { %s167_s29 = sshll.u32 %s762_s1, 4  ;;  %s615_s30 = smov [#allocation4]   ;;  %s168_s29 = int_to_ptr.hbm [resolvable:$true] %s167_s29 }
   0xa   : > { %p398_p6 = pneg %p683_p5  ;;  %s169_s4 = sshll.u32 %s615_s30, 4  ;;  %s170_s4 = int_to_ptr.vmem [resolvable:$true] %s169_s4 }
   0xb   : > { %s27_s5 = sadd.s32 1, %s608_s16  ;;  %p95_p9 = scmp.ne.s32.totalorder %s600_s14, %s596_s13 }
   0xc   : > { %p399_p7 = pnand %p398_p6, %p668_p1  ;;  %p29_p8 = scmp.ge.s32.totalorder %s27_s5, 2 }
   0xd   : > { %s88_s6 = sadd.s32 1, %s600_s14  ;;  %p96_p10 = scmp.eq.s32.totalorder %s612_s17, 0 }
   0xe   : > { %401 = dma.hbm_to_vmem [thread:$0]  (!%p399_p7), %s154_s23, 16, %s156_s26, [#allocation3]  }
   0xf   : > { %404 = dma.hbm_to_vmem [thread:$0]  (!%p399_p7), %s168_s29, 128, %s170_s4, [#allocation5]  }
  0x10   : > { %s775_s5 = smov (%p29_p8, %s27_s5), 0  ;;  %p701_p11 = por %p96_p10, %p95_p9 }
  0x11   : > { %p411_p12 = scmp.lt.s32.totalorder %s612_s17, 2  ;;  %s83_s8 = ssub.s32 %s608_s16, %s775_s5 }
  0x12   : > { %s180_s9 = sand.u32 1, %s612_s17   ;;  %p86_p13 = scmp.eq.s32.totalorder %s83_s8, 0 }
  0x13   : > { %s182_s10 = sand.u32 1, %s600_s14   ;;  %s378_s12 = sshll.u32 %s608_s16, 3 }
  0x14   : > { %s377_s11 = sshll.u32 %s182_s10, 3  ;;  %s189_s25 = scalar_lea.hbm %s763_s2, %s378_s12 }
  0x15   : > { %s712_s21 = scalar_select %p86_p13, %s600_s14, %s88_s6  }
  0x16   : > { %s191_s26 = sshll.u32 %s189_s25, 4  ;;  %s184_s27 = scalar_lea.vmem [#allocation6], %s377_s11  ;;  %s192_s26 = int_to_ptr.hbm [resolvable:$true] %s191_s26 }
  0x17   : > { %s193_s28 = sshll.u32 %s184_s27, 4  ;;  %p406_p0 = pnand %p411_p12, %p701_p11  ;;  %s194_s28 = int_to_ptr.vmem [resolvable:$true] %s193_s28 }
  0x18   : > { %s181_s29 = scalar_lea.sflag [#allocation3], %s180_s9  ;;  %202 = sbr.rel (%p683_p5) target bundleno = 43 (0x2b), region = 32 }
  0x19   : > { %408 = dma.hbm_to_vmem [thread:$0]  (!%p406_p0), %s192_s26, 128, %s194_s28, %s181_s29  }
  0x1d   : > { %579 = dma.done.wait (%p668_p1), [#allocation3], 16  }
  0x1e   : > { %581 = vsyncadd (%p668_p1), [#allocation3], 4294967280 }
  0x1f   : > { %583 = dma.done.wait (%p668_p1), [#allocation5], 128  }
  0x20   : > { %585 = vsyncadd (%p668_p1), [#allocation5], 4294967168  ;;  %s214_s30 = sand.u32 1, %s371_s18   ;;  %s216_s4 = sand.u32 1, %s596_s13  }
  0x21   : > { %s382_s24 = sshll.u32 %s216_s4, 3  ;;  %s215_s6 = scalar_lea.sflag [#allocation3], %s214_s30 }
  0x22   : > { %s218_s7 = scalar_lea.vmem [#allocation6], %s382_s24 }
  0x23   : > { %587 = dma.done.wait (%p676_p4), %s215_s6, 128  }
  0x24   : > { %589 = vsyncadd (%p676_p4), %s215_s6, 4294967168  ;;  %p245_p2 = scmp.lt.s32.totalorder %s604_s15, 1  ;;  %v253_v0 = vld [vmem:[#allocation2] sm:$0x1]  ;;  %v255_v1 = vld [vmem:[%s218_s7] sm:$0xff] }
  0x25   : > { %v256_v2 = vld [vmem:[#allocation4] sm:$0xff] }
  0x26   : > { %s777_s15 = smov (!%p245_p2, %s604_s15), 1  ;;  %v257_v3 = vadd.f32 %v256_v2, %v255_v1 }
  0x27   : > { %s387_s19 = sshll.u32 %s777_s15, 4 }
  0x28   : > { %s252_s10 = scalar_lea.vmem %s764_s3, %s387_s19 }
  0x29   : > { %254 = vst [vmem:[%s252_s10] sm:$0x1] %v253_v0 }
  0x2a   : > { %258 = vst [vmem:[%s252_s10 + $0x1] sm:$0xff] %v257_v3 }
  0x2b PF: > { %s15_s17 = sadd.s32 1, %s612_s17   ;;  %s769_s12 = smov %s596_s13 }
  0x2c   : > { %p12_p1 = scmp.ge.s32.totalorder %s15_s17, 4   ;;  %s770_s13 = smov %s600_s14 }
  0x2d   : > { %s771_s14 = smov %s712_s21  ;;  %s772_s15 = smov %s608_s16 }
  0x2e   : > { %s773_s16 = smov %s775_s5  ;;  %14 = sbr.rel (!%p12_p1) target bundleno = 4 (0x4), region = 81 }
  0x33   :  { %286 = vsyncpa [#allocation3], 1 }
  0x34   :  { %288 = vsyncpa [#allocation3 + $0x1], 1 }
  0x35   :  { %289 = vsyncpa [#allocation5], 1 }

// kernel: tpu_custom_call.1
= control target key start
LH: loop header
LB: loop body
LE: loop exit
PB: predicated region body
PF: predicated region fallthrough
CT: control target
= control target key end

     0   :  { %8 = vsyncpa [#allocation3], 0  ;;  %s761_s0 = inlined_call_operand.hbm [shape: f32[1,1,128], index: 0, kind: input, shape index: {}]   ;;  %s762_s1 = inlined_call_operand.hbm [shape: f32[1,8,128], index: 1, kind: input, shape index: {}]   ;;  %s763_s2 = inlined_call_operand.hbm [shape: f32[2,8,128], index: 2, kind: input, shape index: {}]   ;;  %s764_s3 = inlined_call_operand.vmem [shape: f32[2,9,128], index: 3, kind: output, shape index: {}]  }
   0x1   :  { %9 = vsyncpa [#allocation5], 0  ;;  %s636_s12 = smov 0   ;;  %s638_s13 = smov 0  }
   0x2   :  { %s640_s14 = smov 0   ;;  %s642_s15 = smov 0  }
   0x3   :  { %s644_s16 = smov 0   ;;  %s646_s17 = smov 0  }
   0x4 LB: > { %s371_s18 = sadd.s32 4294967295, %s612_s17   ;;  %p101_p0 = scmp.ne.s32.totalorder %s596_s13, %s592_s12  ;;  %s612_s17 = sphi %s646_s17, %s15_s17   ;;  %s608_s16 = sphi %s644_s16, %s773_s16   ;;  %s604_s15 = sphi %s642_s15, %s772_s15   ;;  %s600_s14 = sphi %s640_s14, %s771_s14   ;;  %s596_s13 = sphi %s638_s13, %s770_s13   ;;  %s592_s12 = sphi %s636_s12, %s769_s12  }
   0x5   : > { %p668_p1 = scmp.eq.s32.totalorder %s371_s18, 0  ;;  %p373_p2 = scmp.ge.s32.totalorder %s612_s17, 1 }
   0x6   : > { %p140_p3 = scmp.lt.s32.totalorder %s612_s17, 3  ;;  %s153_s23 = sshll.u32 %s761_s0, 4  ;;  %s154_s23 = int_to_ptr.hbm [resolvable:$true] %s153_s23 }
   0x7   : > { %p676_p4 = por %p668_p1, %p101_p0  ;;  %s614_s25 = smov [#allocation2]  }
   0x8   : > { %p683_p5 = pnand %p373_p2, %p140_p3  ;;  %s155_s26 = sshll.u32 %s614_s25, 4  ;;  %s156_s26 = int_to_ptr.vmem [resolvable:$true] %s155_s26 }
   0x9   : > { %s167_s29 = sshll.u32 %s762_s1, 4  ;;  %s615_s30 = smov [#allocation4]   ;;  %s168_s29 = int_to_ptr.hbm [resolvable:$true] %s167_s29 }
   0xa   : > { %p398_p6 = pneg %p683_p5  ;;  %s169_s4 = sshll.u32 %s615_s30, 4  ;;  %s170_s4 = int_to_ptr.vmem [resolvable:$true] %s169_s4 }
   0xb   : > { %s27_s5 = sadd.s32 1, %s608_s16  ;;  %p95_p9 = scmp.ne.s32.totalorder %s600_s14, %s596_s13 }
   0xc   : > { %p399_p7 = pnand %p398_p6, %p668_p1  ;;  %p29_p8 = scmp.ge.s32.totalorder %s27_s5, 2 }
   0xd   : > { %s88_s6 = sadd.s32 1, %s600_s14  ;;  %p96_p10 = scmp.eq.s32.totalorder %s612_s17, 0 }
   0xe   : > { %401 = dma.hbm_to_vmem [thread:$0]  (!%p399_p7), %s154_s23, 16, %s156_s26, [#allocation3]  }
   0xf   : > { %404 = dma.hbm_to_vmem [thread:$0]  (!%p399_p7), %s168_s29, 128, %s170_s4, [#allocation5]  }
  0x10   : > { %s775_s5 = smov (%p29_p8, %s27_s5), 0  ;;  %p701_p11 = por %p96_p10, %p95_p9 }
  0x11   : > { %p411_p12 = scmp.lt.s32.totalorder %s612_s17, 2  ;;  %s83_s8 = ssub.s32 %s608_s16, %s775_s5 }
  0x12   : > { %s180_s9 = sand.u32 1, %s612_s17   ;;  %p86_p13 = scmp.eq.s32.totalorder %s83_s8, 0 }
  0x13   : > { %s182_s10 = sand.u32 1, %s600_s14   ;;  %s378_s12 = sshll.u32 %s608_s16, 3 }
  0x14   : > { %s377_s11 = sshll.u32 %s182_s10, 3  ;;  %s189_s25 = scalar_lea.hbm %s763_s2, %s378_s12 }
  0x15   : > { %s712_s21 = scalar_select %p86_p13, %s600_s14, %s88_s6  }
  0x16   : > { %s191_s26 = sshll.u32 %s189_s25, 4  ;;  %s184_s27 = scalar_lea.vmem [#allocation6], %s377_s11  ;;  %s192_s26 = int_to_ptr.hbm [resolvable:$true] %s191_s26 }
  0x17   : > { %s193_s28 = sshll.u32 %s184_s27, 4  ;;  %p406_p0 = pnand %p411_p12, %p701_p11  ;;  %s194_s28 = int_to_ptr.vmem [resolvable:$true] %s193_s28 }
  0x18   : > { %s181_s29 = scalar_lea.sflag [#allocation3], %s180_s9  ;;  %202 = sbr.rel (%p683_p5) target bundleno = 43 (0x2b), region = 32 }
  0x19   : > { %408 = dma.hbm_to_vmem [thread:$0]  (!%p406_p0), %s192_s26, 128, %s194_s28, %s181_s29  }
  0x1d   : > { %579 = dma.done.wait (%p668_p1), [#allocation3], 16  }
  0x1e   : > { %581 = vsyncadd (%p668_p1), [#allocation3], 4294967280 }
  0x1f   : > { %583 = dma.done.wait (%p668_p1), [#allocation5], 128  }
  0x20   : > { %585 = vsyncadd (%p668_p1), [#allocation5], 4294967168  ;;  %s214_s30 = sand.u32 1, %s371_s18   ;;  %s216_s4 = sand.u32 1, %s596_s13  }
  0x21   : > { %s382_s24 = sshll.u32 %s216_s4, 3  ;;  %s215_s6 = scalar_lea.sflag [#allocation3], %s214_s30 }
  0x22   : > { %s218_s7 = scalar_lea.vmem [#allocation6], %s382_s24 }
  0x23   : > { %587 = dma.done.wait (%p676_p4), %s215_s6, 128  }
  0x24   : > { %589 = vsyncadd (%p676_p4), %s215_s6, 4294967168  ;;  %p245_p2 = scmp.lt.s32.totalorder %s604_s15, 1  ;;  %v253_v0 = vld [vmem:[#allocation2] sm:$0x1]  ;;  %v255_v1 = vld [vmem:[%s218_s7] sm:$0xff] }
  0x25   : > { %v256_v2 = vld [vmem:[#allocation4] sm:$0xff] }
  0x26   : > { %s777_s15 = smov (!%p245_p2, %s604_s15), 1  ;;  %v257_v3 = vadd.f32 %v256_v2, %v255_v1 }
  0x27   : > { %s387_s19 = sshll.u32 %s777_s15, 4 }
  0x28   : > { %s252_s10 = scalar_lea.vmem %s764_s3, %s387_s19 }
  0x29   : > { %254 = vst [vmem:[%s252_s10] sm:$0x1] %v253_v0 }
  0x2a   : > { %258 = vst [vmem:[%s252_s10 + $0x1] sm:$0xff] %v257_v3 }
  0x2b PF: > { %s15_s17 = sadd.s32 1, %s612_s17   ;;  %s769_s12 = smov %s596_s13 }
  0x2c   : > { %p12_p1 = scmp.ge.s32.totalorder %s15_s17, 4   ;;  %s770_s13 = smov %s600_s14 }
  0x2d   : > { %s771_s14 = smov %s712_s21  ;;  %s772_s15 = smov %s608_s16 }
  0x2e   : > { %s773_s16 = smov %s775_s5  ;;  %14 = sbr.rel (!%p12_p1) target bundleno = 4 (0x4), region = 81 }
  0x33   :  { %286 = vsyncpa [#allocation3], 1 }
  0x34   :  { %288 = vsyncpa [#allocation3 + $0x1], 1 }
  0x35   :  { %289 = vsyncpa [#allocation5], 1 }

</bundles_post_ra>
